<compile_context>
chip_gen: v6e
topology: v6e:2x2x1
jax: 0.10.0
libtpu: 0.0.40
codegen_flags: <defaults>
</compile_context>

<pallas_src>
import jax
import jax.numpy as jnp
from jax import lax
from jax.experimental import pallas as pl
from jax.experimental.pallas import tpu as pltpu

# ---------------------------------------------------------------------------
# Model config (matches the PyTorch module instantiation).
# ---------------------------------------------------------------------------
N_LABELS = 4
INPUT_DIM = 16          # D
LATENT_DIM = 32         # H
BATCH = 2               # B
SEQ_LEN = 8             # T

LANES = 128             # vreg lane width; conveniently equals 4*H for H=32
BP = 8                  # batch padded to one full sublane block

# Packed-parameter slab row offsets (all 128 lanes wide, 8-aligned rows).
_WIH_R0, _WIH_R1 = 0, INPUT_DIM                 # (16, 128)  W_ih^T
_WHH_R0, _WHH_R1 = 16, 16 + LANES               # (128, 128) W_hh^T, rows H.. zero
_WLIN_R0, _WLIN_R1 = 144, 144 + LANES           # (128, 128) W_lin^T, padded
_BIAS_R = 272                                   # row 272: b_ih + b_hh
_BLIN_R = 280                                   # row 280: b_lin (lane padded)
_SLAB_ROWS = 288


def lstm_kernel(x_ref, p_ref, out_ref):
    """Whole forward pass in one kernel invocation.

    x_ref  : (T*BP, D)        time-major, batch-padded input
    p_ref  : (288, 128)       packed parameter slab (see _pack_params)
    out_ref: (BP, 128)        sigmoid(linear(h_T)), lane/batch padded
    """
    H = LATENT_DIM

    wih = p_ref[_WIH_R0:_WIH_R1, :]          # (D, 4H)
    whh = p_ref[_WHH_R0:_WHH_R1, :]          # (4H, 4H): real rows [0:H), rest zero
    bias = p_ref[_BIAS_R:_BIAS_R + 1, :]     # (1, 4H)   b_ih + b_hh

    # Hoisted, time-batched input projection (off the serial chain): one
    # (T*BP, D) @ (D, 4H) MXU matmul + bias instead of T tiny per-step matmuls.
    x_proj = (jnp.dot(x_ref[...], wih, preferred_element_type=jnp.float32)
              + bias)                                            # (T*BP, 4H)

    h = jnp.zeros((BP, LANES), jnp.float32)   # lanes [0:H) meaningful
    c = jnp.zeros((BP, LANES), jnp.float32)

    # Fully unrolled recurrence (T static).  Only h @ W_hh^T sits on the serial
    # dependency chain.  Junk in h's lanes [H:) multiplies whh's zero rows -> 0.
    # TODO(synk): if a bundle dump shows Mosaic re-feeding the W_hh RHS every
    # step, switch to pltpu.matmul_push_rhs/matmul_acc_lhs/matmul_pop to keep
    # it weight-stationary (and MRB accumulation on v7x).
    for t in range(SEQ_LEN):
        gates = x_proj[t * BP:(t + 1) * BP, :] + jnp.dot(
            h, whh, preferred_element_type=jnp.float32)          # (BP, 4H)
        sig = jax.nn.sigmoid(gates)   # one full-vreg EUP call: [i | f | . | o]
        tng = jnp.tanh(gates)         # one full-vreg EUP call: [. | . | g | .]
        # Align f / g / o lane groups onto the i-gate lanes [0:H) via XLU rolls
        # (roll semantics match jnp.roll: out[j] = in[(j - shift) mod 4H]).
        f_g = pltpu.roll(sig, 3 * H, 1)        # lanes [0:H) <- sigmoid(f)
        g_g = pltpu.roll(tng, 2 * H, 1)        # lanes [0:H) <- tanh(g)
        o_g = pltpu.roll(sig, 1 * H, 1)        # lanes [0:H) <- sigmoid(o)
        # sig itself is the i-gate on lanes [0:H).  Lanes [H:) carry bounded
        # junk that never leaks back into the valid lanes (elementwise only,
        # and annihilated by whh / wlin zero rows).
        c = f_g * c + sig * g_g
        h = o_g * jnp.tanh(c)

    wlin = p_ref[_WLIN_R0:_WLIN_R1, :]        # (4H, 128): real block [0:H, 0:n_labels]
    blin = p_ref[_BLIN_R:_BLIN_R + 1, :]      # (1, 128)
    logits = jnp.dot(h, wlin, preferred_element_type=jnp.float32) + blin
    out_ref[...] = jax.nn.sigmoid(logits)     # (BP, 128): single unmasked store


def _pack_params(w_ih, w_hh, b_ih, b_hh, w_lin, b_lin):
    """Pack all weights/biases into one lane-padded (288, 128) f32 slab."""
    H = LATENT_DIM
    slab = jnp.zeros((_SLAB_ROWS, LANES), jnp.float32)
    slab = slab.at[_WIH_R0:_WIH_R1, :].set(jnp.transpose(w_ih))          # (D, 4H)
    slab = slab.at[_WHH_R0:_WHH_R0 + H, :].set(jnp.transpose(w_hh))      # (H, 4H)
    slab = slab.at[_WLIN_R0:_WLIN_R0 + H, :N_LABELS].set(jnp.transpose(w_lin))
    slab = slab.at[_BIAS_R, :].set(b_ih + b_hh)
    slab = slab.at[_BLIN_R, :N_LABELS].set(b_lin)
    return slab


def lstm_model_forward(x, params_slab):
    B, T, D = x.shape
    assert B <= BP and T == SEQ_LEN and D == INPUT_DIM

    # Layout plumbing in the wrapper: time-major, batch padded to BP=8 rows so
    # each step's gate-preactivation slice is one aligned 8-row (vreg) block.
    x_tm = jnp.swapaxes(x, 0, 1)                          # (T, B, D)
    x_tm = jnp.pad(x_tm, ((0, 0), (0, BP - B), (0, 0)))   # (T, BP, D)
    x_tm = x_tm.reshape(T * BP, D)

    vmem = pl.BlockSpec(memory_space=pltpu.MemorySpace.VMEM)
    out = pl.pallas_call(
        lstm_kernel,
        out_shape=jax.ShapeDtypeStruct((BP, LANES), jnp.float32),
        in_specs=[vmem, vmem],        # 2 input DMAs total: x + packed params
        out_specs=vmem,
    )(x_tm, params_slab)
    return out[:B, :N_LABELS]


def reference_forward(x, w_ih, w_hh, b_ih, b_hh, w_lin, b_lin):
    """Pure-JAX reference matching PyTorch LSTM + Linear + Sigmoid semantics."""
    B, T, D = x.shape
    H = LATENT_DIM
    wih_t, whh_t = jnp.transpose(w_ih), jnp.transpose(w_hh)
    bias = b_ih + b_hh

    def step(carry, x_t):
        h, c = carry
        gates = x_t @ wih_t + h @ whh_t + bias
        i_g = jax.nn.sigmoid(gates[:, 0 * H:1 * H])
        f_g = jax.nn.sigmoid(gates[:, 1 * H:2 * H])
        g_g = jnp.tanh(gates[:, 2 * H:3 * H])
        o_g = jax.nn.sigmoid(gates[:, 3 * H:4 * H])
        c = f_g * c + i_g * g_g
        h = o_g * jnp.tanh(c)
        return (h, c), None

    h0 = jnp.zeros((B, H), jnp.float32)
    c0 = jnp.zeros((B, H), jnp.float32)
    (h_last, _), _ = lax.scan(step, (h0, c0), jnp.swapaxes(x, 0, 1))
    return jax.nn.sigmoid(h_last @ jnp.transpose(w_lin) + b_lin)


if __name__ == "__main__":
    key = jax.random.PRNGKey(0)
    k = jax.random.split(key, 7)
    bound = 1.0 / jnp.sqrt(LATENT_DIM)  # PyTorch LSTM/Linear init range

    # PyTorch parameter shapes: weight_ih (4H, D), weight_hh (4H, H), biases (4H,)
    w_ih = jax.random.uniform(k[0], (4 * LATENT_DIM, INPUT_DIM), jnp.float32, -bound, bound)
    w_hh = jax.random.uniform(k[1], (4 * LATENT_DIM, LATENT_DIM), jnp.float32, -bound, bound)
    b_ih = jax.random.uniform(k[2], (4 * LATENT_DIM,), jnp.float32, -bound, bound)
    b_hh = jax.random.uniform(k[3], (4 * LATENT_DIM,), jnp.float32, -bound, bound)
    # Linear: weight (n_labels, latent_dim), bias (n_labels,)
    w_lin = jax.random.uniform(k[4], (N_LABELS, LATENT_DIM), jnp.float32, -bound, bound)
    b_lin = jax.random.uniform(k[5], (N_LABELS,), jnp.float32, -bound, bound)

    x = jax.random.normal(k[6], (BATCH, SEQ_LEN, INPUT_DIM), jnp.float32)

    params = _pack_params(w_ih, w_hh, b_ih, b_hh, w_lin, b_lin)  # one-time glue

    out = lstm_model_forward(x, params)
    out = jax.block_until_ready(out)

    ref = reference_forward(x, w_ih, w_hh, b_ih, b_hh, w_lin, b_lin)
    assert out.shape == (BATCH, N_LABELS)
    assert jnp.allclose(out, ref, atol=1e-5, rtol=1e-5), "mismatch vs JAX reference"

    print("KERNEL_OK")
</pallas_src>

<mosaic_0001>
module attributes {stable_mosaic.version = 11 : i64} {
  func.func @lstm_kernel(%arg0: memref<64x16xf32, #tpu.memory_space<vmem>>, %arg1: memref<288x128xf32, #tpu.memory_space<vmem>>, %arg2: memref<8x128xf32, #tpu.memory_space<vmem>>) attributes {dimension_semantics = [], scalar_prefetch = 0 : i64, scratch_operands = 0 : i64, tpu.core_type = #tpu.core_type<tc>} {
    %c0 = arith.constant 0 : index
    %c0_0 = arith.constant 0 : index
    %0 = vector.load %arg1[%c0, %c0_0] : memref<288x128xf32, #tpu.memory_space<vmem>>, vector<16x128xf32>
    %c16 = arith.constant 16 : index
    %c0_1 = arith.constant 0 : index
    %1 = vector.load %arg1[%c16, %c0_1] : memref<288x128xf32, #tpu.memory_space<vmem>>, vector<128x128xf32>
    %c272 = arith.constant 272 : index
    %c0_2 = arith.constant 0 : index
    %2 = vector.load %arg1[%c272, %c0_2] : memref<288x128xf32, #tpu.memory_space<vmem>>, vector<1x128xf32>
    %c0_3 = arith.constant 0 : index
    %c0_4 = arith.constant 0 : index
    %3 = vector.load %arg0[%c0_3, %c0_4] : memref<64x16xf32, #tpu.memory_space<vmem>>, vector<64x16xf32>
    %cst = arith.constant dense<0.000000e+00> : vector<64x128xf32>
    %4 = tpu.matmul %3, %0, %cst {dimension_numbers = #tpu.dot_dimension_numbers<[1], [0], [0], [1], [0, 0, 1, 1], [], []>} : vector<64x16xf32>, vector<16x128xf32>, vector<64x128xf32> -> vector<64x128xf32>
    %5 = vector.broadcast %2 : vector<1x128xf32> to vector<64x128xf32>
    %6 = arith.addf %4, %5 : vector<64x128xf32>
    %cst_5 = arith.constant 0.000000e+00 : f32
    %7 = vector.broadcast %cst_5 : f32 to vector<8x128xf32>
    %cst_6 = arith.constant 0.000000e+00 : f32
    %8 = vector.broadcast %cst_6 : f32 to vector<8x128xf32>
    %9 = vector.extract_strided_slice %6 {offsets = [0, 0], sizes = [8, 128], strides = [1, 1]} : vector<64x128xf32> to vector<8x128xf32>
    %cst_7 = arith.constant dense<0.000000e+00> : vector<8x128xf32>
    %10 = tpu.matmul %7, %1, %cst_7 {dimension_numbers = #tpu.dot_dimension_numbers<[1], [0], [0], [1], [0, 0, 1, 1], [], []>} : vector<8x128xf32>, vector<128x128xf32>, vector<8x128xf32> -> vector<8x128xf32>
    %11 = arith.addf %9, %10 : vector<8x128xf32>
    %12 = arith.negf %11 : vector<8x128xf32>
    %13 = math.exp %12 : vector<8x128xf32>
    %cst_8 = arith.constant 1.000000e+00 : f32
    %14 = vector.broadcast %cst_8 : f32 to vector<8x128xf32>
    %15 = arith.addf %14, %13 : vector<8x128xf32>
    %16 = arith.divf %14, %15 : vector<8x128xf32>
    %17 = math.tanh %11 : vector<8x128xf32>
    %c96_i32 = arith.constant 96 : i32
    %18 = tpu.dynamic_rotate %16 by %c96_i32 dim 1 : vector<8x128xf32>, i32 -> vector<8x128xf32>
    %c64_i32 = arith.constant 64 : i32
    %19 = tpu.dynamic_rotate %17 by %c64_i32 dim 1 : vector<8x128xf32>, i32 -> vector<8x128xf32>
    %c32_i32 = arith.constant 32 : i32
    %20 = tpu.dynamic_rotate %16 by %c32_i32 dim 1 : vector<8x128xf32>, i32 -> vector<8x128xf32>
    %21 = arith.mulf %18, %8 : vector<8x128xf32>
    %22 = arith.mulf %16, %19 : vector<8x128xf32>
    %23 = arith.addf %21, %22 : vector<8x128xf32>
    %24 = math.tanh %23 : vector<8x128xf32>
    %25 = arith.mulf %20, %24 : vector<8x128xf32>
    %26 = vector.extract_strided_slice %6 {offsets = [8, 0], sizes = [8, 128], strides = [1, 1]} : vector<64x128xf32> to vector<8x128xf32>
    %cst_9 = arith.constant dense<0.000000e+00> : vector<8x128xf32>
    %27 = tpu.matmul %25, %1, %cst_9 {dimension_numbers = #tpu.dot_dimension_numbers<[1], [0], [0], [1], [0, 0, 1, 1], [], []>} : vector<8x128xf32>, vector<128x128xf32>, vector<8x128xf32> -> vector<8x128xf32>
    %28 = arith.addf %26, %27 : vector<8x128xf32>
    %29 = arith.negf %28 : vector<8x128xf32>
    %30 = math.exp %29 : vector<8x128xf32>
    %cst_10 = arith.constant 1.000000e+00 : f32
    %31 = vector.broadcast %cst_10 : f32 to vector<8x128xf32>
    %32 = arith.addf %31, %30 : vector<8x128xf32>
    %33 = arith.divf %31, %32 : vector<8x128xf32>
    %34 = math.tanh %28 : vector<8x128xf32>
    %c96_i32_11 = arith.constant 96 : i32
    %35 = tpu.dynamic_rotate %33 by %c96_i32_11 dim 1 : vector<8x128xf32>, i32 -> vector<8x128xf32>
    %c64_i32_12 = arith.constant 64 : i32
    %36 = tpu.dynamic_rotate %34 by %c64_i32_12 dim 1 : vector<8x128xf32>, i32 -> vector<8x128xf32>
    %c32_i32_13 = arith.constant 32 : i32
    %37 = tpu.dynamic_rotate %33 by %c32_i32_13 dim 1 : vector<8x128xf32>, i32 -> vector<8x128xf32>
    %38 = arith.mulf %35, %23 : vector<8x128xf32>
    %39 = arith.mulf %33, %36 : vector<8x128xf32>
    %40 = arith.addf %38, %39 : vector<8x128xf32>
    %41 = math.tanh %40 : vector<8x128xf32>
    %42 = arith.mulf %37, %41 : vector<8x128xf32>
    %43 = vector.extract_strided_slice %6 {offsets = [16, 0], sizes = [8, 128], strides = [1, 1]} : vector<64x128xf32> to vector<8x128xf32>
    %cst_14 = arith.constant dense<0.000000e+00> : vector<8x128xf32>
    %44 = tpu.matmul %42, %1, %cst_14 {dimension_numbers = #tpu.dot_dimension_numbers<[1], [0], [0], [1], [0, 0, 1, 1], [], []>} : vector<8x128xf32>, vector<128x128xf32>, vector<8x128xf32> -> vector<8x128xf32>
    %45 = arith.addf %43, %44 : vector<8x128xf32>
    %46 = arith.negf %45 : vector<8x128xf32>
    %47 = math.exp %46 : vector<8x128xf32>
    %cst_15 = arith.constant 1.000000e+00 : f32
    %48 = vector.broadcast %cst_15 : f32 to vector<8x128xf32>
    %49 = arith.addf %48, %47 : vector<8x128xf32>
    %50 = arith.divf %48, %49 : vector<8x128xf32>
    %51 = math.tanh %45 : vector<8x128xf32>
    %c96_i32_16 = arith.constant 96 : i32
    %52 = tpu.dynamic_rotate %50 by %c96_i32_16 dim 1 : vector<8x128xf32>, i32 -> vector<8x128xf32>
    %c64_i32_17 = arith.constant 64 : i32
    %53 = tpu.dynamic_rotate %51 by %c64_i32_17 dim 1 : vector<8x128xf32>, i32 -> vector<8x128xf32>
    %c32_i32_18 = arith.constant 32 : i32
    %54 = tpu.dynamic_rotate %50 by %c32_i32_18 dim 1 : vector<8x128xf32>, i32 -> vector<8x128xf32>
    %55 = arith.mulf %52, %40 : vector<8x128xf32>
    %56 = arith.mulf %50, %53 : vector<8x128xf32>
    %57 = arith.addf %55, %56 : vector<8x128xf32>
    %58 = math.tanh %57 : vector<8x128xf32>
    %59 = arith.mulf %54, %58 : vector<8x128xf32>
    %60 = vector.extract_strided_slice %6 {offsets = [24, 0], sizes = [8, 128], strides = [1, 1]} : vector<64x128xf32> to vector<8x128xf32>
    %cst_19 = arith.constant dense<0.000000e+00> : vector<8x128xf32>
    %61 = tpu.matmul %59, %1, %cst_19 {dimension_numbers = #tpu.dot_dimension_numbers<[1], [0], [0], [1], [0, 0, 1, 1], [], []>} : vector<8x128xf32>, vector<128x128xf32>, vector<8x128xf32> -> vector<8x128xf32>
    %62 = arith.addf %60, %61 : vector<8x128xf32>
    %63 = arith.negf %62 : vector<8x128xf32>
    %64 = math.exp %63 : vector<8x128xf32>
    %cst_20 = arith.constant 1.000000e+00 : f32
    %65 = vector.broadcast %cst_20 : f32 to vector<8x128xf32>
    %66 = arith.addf %65, %64 : vector<8x128xf32>
    %67 = arith.divf %65, %66 : vector<8x128xf32>
    %68 = math.tanh %62 : vector<8x128xf32>
    %c96_i32_21 = arith.constant 96 : i32
    %69 = tpu.dynamic_rotate %67 by %c96_i32_21 dim 1 : vector<8x128xf32>, i32 -> vector<8x128xf32>
    %c64_i32_22 = arith.constant 64 : i32
    %70 = tpu.dynamic_rotate %68 by %c64_i32_22 dim 1 : vector<8x128xf32>, i32 -> vector<8x128xf32>
    %c32_i32_23 = arith.constant 32 : i32
    %71 = tpu.dynamic_rotate %67 by %c32_i32_23 dim 1 : vector<8x128xf32>, i32 -> vector<8x128xf32>
    %72 = arith.mulf %69, %57 : vector<8x128xf32>
    %73 = arith.mulf %67, %70 : vector<8x128xf32>
    %74 = arith.addf %72, %73 : vector<8x128xf32>
    %75 = math.tanh %74 : vector<8x128xf32>
    %76 = arith.mulf %71, %75 : vector<8x128xf32>
    %77 = vector.extract_strided_slice %6 {offsets = [32, 0], sizes = [8, 128], strides = [1, 1]} : vector<64x128xf32> to vector<8x128xf32>
    %cst_24 = arith.constant dense<0.000000e+00> : vector<8x128xf32>
    %78 = tpu.matmul %76, %1, %cst_24 {dimension_numbers = #tpu.dot_dimension_numbers<[1], [0], [0], [1], [0, 0, 1, 1], [], []>} : vector<8x128xf32>, vector<128x128xf32>, vector<8x128xf32> -> vector<8x128xf32>
    %79 = arith.addf %77, %78 : vector<8x128xf32>
    %80 = arith.negf %79 : vector<8x128xf32>
    %81 = math.exp %80 : vector<8x128xf32>
    %cst_25 = arith.constant 1.000000e+00 : f32
    %82 = vector.broadcast %cst_25 : f32 to vector<8x128xf32>
    %83 = arith.addf %82, %81 : vector<8x128xf32>
    %84 = arith.divf %82, %83 : vector<8x128xf32>
    %85 = math.tanh %79 : vector<8x128xf32>
    %c96_i32_26 = arith.constant 96 : i32
    %86 = tpu.dynamic_rotate %84 by %c96_i32_26 dim 1 : vector<8x128xf32>, i32 -> vector<8x128xf32>
    %c64_i32_27 = arith.constant 64 : i32
    %87 = tpu.dynamic_rotate %85 by %c64_i32_27 dim 1 : vector<8x128xf32>, i32 -> vector<8x128xf32>
    %c32_i32_28 = arith.constant 32 : i32
    %88 = tpu.dynamic_rotate %84 by %c32_i32_28 dim 1 : vector<8x128xf32>, i32 -> vector<8x128xf32>
    %89 = arith.mulf %86, %74 : vector<8x128xf32>
    %90 = arith.mulf %84, %87 : vector<8x128xf32>
    %91 = arith.addf %89, %90 : vector<8x128xf32>
    %92 = math.tanh %91 : vector<8x128xf32>
    %93 = arith.mulf %88, %92 : vector<8x128xf32>
    %94 = vector.extract_strided_slice %6 {offsets = [40, 0], sizes = [8, 128], strides = [1, 1]} : vector<64x128xf32> to vector<8x128xf32>
    %cst_29 = arith.constant dense<0.000000e+00> : vector<8x128xf32>
    %95 = tpu.matmul %93, %1, %cst_29 {dimension_numbers = #tpu.dot_dimension_numbers<[1], [0], [0], [1], [0, 0, 1, 1], [], []>} : vector<8x128xf32>, vector<128x128xf32>, vector<8x128xf32> -> vector<8x128xf32>
    %96 = arith.addf %94, %95 : vector<8x128xf32>
    %97 = arith.negf %96 : vector<8x128xf32>
    %98 = math.exp %97 : vector<8x128xf32>
    %cst_30 = arith.constant 1.000000e+00 : f32
    %99 = vector.broadcast %cst_30 : f32 to vector<8x128xf32>
    %100 = arith.addf %99, %98 : vector<8x128xf32>
    %101 = arith.divf %99, %100 : vector<8x128xf32>
    %102 = math.tanh %96 : vector<8x128xf32>
    %c96_i32_31 = arith.constant 96 : i32
    %103 = tpu.dynamic_rotate %101 by %c96_i32_31 dim 1 : vector<8x128xf32>, i32 -> vector<8x128xf32>
    %c64_i32_32 = arith.constant 64 : i32
    %104 = tpu.dynamic_rotate %102 by %c64_i32_32 dim 1 : vector<8x128xf32>, i32 -> vector<8x128xf32>
    %c32_i32_33 = arith.constant 32 : i32
    %105 = tpu.dynamic_rotate %101 by %c32_i32_33 dim 1 : vector<8x128xf32>, i32 -> vector<8x128xf32>
    %106 = arith.mulf %103, %91 : vector<8x128xf32>
    %107 = arith.mulf %101, %104 : vector<8x128xf32>
    %108 = arith.addf %106, %107 : vector<8x128xf32>
    %109 = math.tanh %108 : vector<8x128xf32>
    %110 = arith.mulf %105, %109 : vector<8x128xf32>
    %111 = vector.extract_strided_slice %6 {offsets = [48, 0], sizes = [8, 128], strides = [1, 1]} : vector<64x128xf32> to vector<8x128xf32>
    %cst_34 = arith.constant dense<0.000000e+00> : vector<8x128xf32>
    %112 = tpu.matmul %110, %1, %cst_34 {dimension_numbers = #tpu.dot_dimension_numbers<[1], [0], [0], [1], [0, 0, 1, 1], [], []>} : vector<8x128xf32>, vector<128x128xf32>, vector<8x128xf32> -> vector<8x128xf32>
    %113 = arith.addf %111, %112 : vector<8x128xf32>
    %114 = arith.negf %113 : vector<8x128xf32>
    %115 = math.exp %114 : vector<8x128xf32>
    %cst_35 = arith.constant 1.000000e+00 : f32
    %116 = vector.broadcast %cst_35 : f32 to vector<8x128xf32>
    %117 = arith.addf %116, %115 : vector<8x128xf32>
    %118 = arith.divf %116, %117 : vector<8x128xf32>
    %119 = math.tanh %113 : vector<8x128xf32>
    %c96_i32_36 = arith.constant 96 : i32
    %120 = tpu.dynamic_rotate %118 by %c96_i32_36 dim 1 : vector<8x128xf32>, i32 -> vector<8x128xf32>
    %c64_i32_37 = arith.constant 64 : i32
    %121 = tpu.dynamic_rotate %119 by %c64_i32_37 dim 1 : vector<8x128xf32>, i32 -> vector<8x128xf32>
    %c32_i32_38 = arith.constant 32 : i32
    %122 = tpu.dynamic_rotate %118 by %c32_i32_38 dim 1 : vector<8x128xf32>, i32 -> vector<8x128xf32>
    %123 = arith.mulf %120, %108 : vector<8x128xf32>
    %124 = arith.mulf %118, %121 : vector<8x128xf32>
    %125 = arith.addf %123, %124 : vector<8x128xf32>
    %126 = math.tanh %125 : vector<8x128xf32>
    %127 = arith.mulf %122, %126 : vector<8x128xf32>
    %128 = vector.extract_strided_slice %6 {offsets = [56, 0], sizes = [8, 128], strides = [1, 1]} : vector<64x128xf32> to vector<8x128xf32>
    %cst_39 = arith.constant dense<0.000000e+00> : vector<8x128xf32>
    %129 = tpu.matmul %127, %1, %cst_39 {dimension_numbers = #tpu.dot_dimension_numbers<[1], [0], [0], [1], [0, 0, 1, 1], [], []>} : vector<8x128xf32>, vector<128x128xf32>, vector<8x128xf32> -> vector<8x128xf32>
    %130 = arith.addf %128, %129 : vector<8x128xf32>
    %131 = arith.negf %130 : vector<8x128xf32>
    %132 = math.exp %131 : vector<8x128xf32>
    %cst_40 = arith.constant 1.000000e+00 : f32
    %133 = vector.broadcast %cst_40 : f32 to vector<8x128xf32>
    %134 = arith.addf %133, %132 : vector<8x128xf32>
    %135 = arith.divf %133, %134 : vector<8x128xf32>
    %136 = math.tanh %130 : vector<8x128xf32>
    %c96_i32_41 = arith.constant 96 : i32
    %137 = tpu.dynamic_rotate %135 by %c96_i32_41 dim 1 : vector<8x128xf32>, i32 -> vector<8x128xf32>
    %c64_i32_42 = arith.constant 64 : i32
    %138 = tpu.dynamic_rotate %136 by %c64_i32_42 dim 1 : vector<8x128xf32>, i32 -> vector<8x128xf32>
    %c32_i32_43 = arith.constant 32 : i32
    %139 = tpu.dynamic_rotate %135 by %c32_i32_43 dim 1 : vector<8x128xf32>, i32 -> vector<8x128xf32>
    %140 = arith.mulf %137, %125 : vector<8x128xf32>
    %141 = arith.mulf %135, %138 : vector<8x128xf32>
    %142 = arith.addf %140, %141 : vector<8x128xf32>
    %143 = math.tanh %142 : vector<8x128xf32>
    %144 = arith.mulf %139, %143 : vector<8x128xf32>
    %c144 = arith.constant 144 : index
    %c0_44 = arith.constant 0 : index
    %145 = vector.load %arg1[%c144, %c0_44] : memref<288x128xf32, #tpu.memory_space<vmem>>, vector<128x128xf32>
    %c280 = arith.constant 280 : index
    %c0_45 = arith.constant 0 : index
    %146 = vector.load %arg1[%c280, %c0_45] : memref<288x128xf32, #tpu.memory_space<vmem>>, vector<1x128xf32>
    %cst_46 = arith.constant dense<0.000000e+00> : vector<8x128xf32>
    %147 = tpu.matmul %144, %145, %cst_46 {dimension_numbers = #tpu.dot_dimension_numbers<[1], [0], [0], [1], [0, 0, 1, 1], [], []>} : vector<8x128xf32>, vector<128x128xf32>, vector<8x128xf32> -> vector<8x128xf32>
    %148 = vector.broadcast %146 : vector<1x128xf32> to vector<8x128xf32>
    %149 = arith.addf %147, %148 : vector<8x128xf32>
    %150 = arith.negf %149 : vector<8x128xf32>
    %151 = math.exp %150 : vector<8x128xf32>
    %cst_47 = arith.constant 1.000000e+00 : f32
    %152 = vector.broadcast %cst_47 : f32 to vector<8x128xf32>
    %153 = arith.addf %152, %151 : vector<8x128xf32>
    %154 = arith.divf %152, %153 : vector<8x128xf32>
    %c0_48 = arith.constant 0 : index
    %c0_49 = arith.constant 0 : index
    %155 = vector.load %arg2[%c0_48, %c0_49] : memref<8x128xf32, #tpu.memory_space<vmem>>, vector<8x128xf32>
    tpu.vector_store %arg2[%c0_48, %c0_49], %154 {strides = array<i32>} : memref<8x128xf32, #tpu.memory_space<vmem>>, vector<8x128xf32>,
    return
  }
}

</mosaic_0001>

<bundles_post_ra>
// kernel: tpu_custom_call.1
= control target key start
LH: loop header
LB: loop body
LE: loop exit
PB: predicated region body
PF: predicated region fallthrough
CT: control target
= control target key end

     0   :  { %7 = vsyncpa [#allocation3], 0  ;;  %s2094_s0 = inlined_call_operand.vmem [shape: f32[64,16], index: 0, kind: input, shape index: {}]   ;;  %s2095_s1 = inlined_call_operand.hbm [shape: f32[288,128], index: 1, kind: input, shape index: {}]   ;;  %s2096_s2 = inlined_call_operand.hbm [shape: f32[8,128], index: 2, kind: output, shape index: {}]  }
   0x1   :  { %8 = vsyncpa [#allocation4], 0  ;;  %s1646_s9 = smov [#allocation2]  }
   0x2   :  { %s16_s10 = sshll.u32 %s1646_s9, 4  ;;  %s17_s10 = int_to_ptr.vmem [resolvable:$true] %s16_s10 }
   0x3   :  { %s1610_s11 = scalar_lea.vmem %s17_s10, 4608  ;;  %p1615_p1 = scmp.lt.s32.totalorder %s17_s10, %s17_s10 }
   0x4   :  { %p1611_p0 = scmp.ne.s32.totalorder %s17_s10, %s1610_s11  ;;  %p1616_p2 = scmp.lt.s32.totalorder %s1610_s11, %s1610_s11 }
   0x6   :  { %p1617_p3 = por %p1616_p2, %p1615_p1 }
   0x8   :  { %p1618_p4 = pnand %p1617_p3, %p1611_p0 }
   0xa   :  { %1621 = shalt.err (!%p1618_p4)
}
   0xb   :  { %s1647_s12 = smov 128   ;;  %s1648_s13 = smov 8  }
   0xc   :  { %22 = dma.hbm_to_vmem [thread:$0]  %s2095_s1, 4608, %s17_s10, [#allocation3], %s1647_s12, %s1647_s12, %s1648_s13  }
   0xd   :  { %1642 = dma.done.wait [#allocation3], 4608  }
   0xe   :  { %1643 = vsyncadd [#allocation3], 4294962688  ;;  %v1649_v0 = vmov 0.0   ;;  %vm1650_vm0 = vmmov 0   ;;  %v1676_v1 = vld [vmem:[#allocation2 + $0x88] sm:$0xff]  ;;  %v1678_v2 = vld [vmem:[#allocation2 + $0x80] sm:$0xff] }
   0xf   :  { %1210 = vmatprep.subr.mxu1 %v1649_v0  ;;  %1242 = vmatprep.mubr.msk.f32.mxu1 %vm1650_vm0, %v1649_v0  ;;  %v1682_v3 = vld [vmem:[#allocation2 + $0x78] sm:$0xff]  ;;  %v27_v4 = vld [vmem:[#allocation2 + $0x8] sm:$0xff]  ;;  %v1686_v5 = vld [vmem:[#allocation2 + $0x70] sm:$0xff]  ;;  %vm57_vm1 = vcmask 130048   ;;  %s1651_s29 = smov 32   ;;  %s1652_s30 = smov 96  }
  0x10   :  { %1211 = vmatpush3.msra.mxu1 %v1676_v1  ;;  %1194 = vmatprep.subr.mxu0 %v27_v4  ;;  %v26_v6 = vld [vmem:[#allocation2] sm:$0xff]  ;;  %v1693_v8 = vld [vmem:[#allocation2 + $0x68] sm:$0xff]  ;;  %v1706_v11 = vld [vmem:[#allocation2 + $0x58] sm:$0xff]  ;;  %s1653_s5 = smov 64  }
  0x11   :  { %1212 = vmatprep.subr.mxu1 %v1649_v0  ;;  %1195 = vmatpush3.msra.mxu0 %v27_v4  ;;  %v45_v7 = vld [vmem:[%s2094_s0] sm:$0xff]  ;;  %v46_v9 = vld [vmem:[%s2094_s0 + $0x8] sm:$0xff]  ;;  %v1712_v12 = vld [vmem:[#allocation2 + $0x50] sm:$0xff] }
  0x12   :  { %1213 = vmatpush3.msra.mxu1 %v1678_v2  ;;  %1196 = vmatprep.subr.mxu0 %v26_v6  ;;  %v1700_v10 = vld [vmem:[#allocation2 + $0x60] sm:$0xff]  ;;  %v1718_v13 = vld [vmem:[#allocation2 + $0x48] sm:$0xff]  ;;  %v1730_v15 = vld [vmem:[#allocation2 + $0x38] sm:$0xff] }
  0x13   :  { %1214 = vmatprep.subr.mxu1 %v1649_v0  ;;  %1197 = vmatpush3.msra.mxu0 %v26_v6  ;;  %v1724_v14 = vld [vmem:[#allocation2 + $0x40] sm:$0xff]  ;;  %v1736_v16 = vld [vmem:[#allocation2 + $0x30] sm:$0xff]  ;;  %v1742_v17 = vld [vmem:[#allocation2 + $0x28] sm:$0xff] }
  0x14   :  { %1215 = vmatpush3.msra.mxu1 %v1682_v3  ;;  %1198 = vmatprep.mubr.msk.f32.mxu0 %vm57_vm1, %v45_v7  ;;  %v1748_v18 = vld [vmem:[#allocation2 + $0x20] sm:$0xff]  ;;  %v1754_v19 = vld [vmem:[#allocation2 + $0x18] sm:$0xff]  ;;  %v1760_v20 = vld [vmem:[#allocation2 + $0x10] sm:$0xff] }
  0x15   :  { %1216 = vmatprep.subr.mxu1 %v1649_v0  ;;  %1199 = vmatmul.mubr.msk.f32.vlgmr.msra.gmra.mxu0 %vm57_vm1, %v46_v9  ;;  %v1818_v22 = vld [vmem:[#allocation2 + $0x110] ss:$0 sm:$0xff]  ;;  %v48_v32 = vld [vmem:[%s2094_s0 + $0x18] sm:$0xff]  ;;  %v49_v33 = vld [vmem:[%s2094_s0 + $0x20] sm:$0xff] }
  0x16   :  { %1217 = vmatpush3.msra.mxu1 %v1686_v5  ;;  %1245 = vmatprep.subr.mxu0 %v1649_v0  ;;  %v47_v31 = vld [vmem:[%s2094_s0 + $0x10] sm:$0xff]  ;;  %v50_v34 = vld [vmem:[%s2094_s0 + $0x28] sm:$0xff]  ;;  %v52_v37 = vld [vmem:[%s2094_s0 + $0x38] sm:$0xff] }
  0x17   :  { %1218 = vmatprep.subr.mxu1 %v1649_v0  ;;  %1246 = vmatpush3.msra.mxu0 %v1676_v1  ;;  %v51_v36 = vld [vmem:[%s2094_s0 + $0x30] sm:$0xff]  ;;  %s1654_s0 = smov [#allocation5]  }
  0x18   :  { %1219 = vmatpush3.msra.mxu1 %v1693_v8  ;;  %1247 = vmatprep.subr.mxu0 %v1649_v0  ;;  %s1003_s6 = sshll.u32 %s1654_s0, 4  ;;  %s1004_s6 = int_to_ptr.vmem [resolvable:$true] %s1003_s6 }
  0x19   :  { %1220 = vmatprep.subr.mxu1 %v1649_v0  ;;  %1248 = vmatpush3.msra.mxu0 %v1678_v2  ;;  %s1622_s7 = scalar_lea.vmem %s1004_s6, 128  ;;  %p1627_p6 = scmp.lt.s32.totalorder %s1004_s6, %s1004_s6 }
  0x1a   :  { %1221 = vmatpush3.msra.mxu1 %v1700_v10  ;;  %1249 = vmatprep.subr.mxu0 %v1649_v0  ;;  %p1623_p5 = scmp.ne.s32.totalorder %s1004_s6, %s1622_s7  ;;  %p1628_p7 = scmp.lt.s32.totalorder %s1622_s7, %s1622_s7 }
  0x1b   :  { %1222 = vmatprep.subr.mxu1 %v1649_v0  ;;  %1250 = vmatpush3.msra.mxu0 %v1682_v3 }
  0x1c   :  { %1223 = vmatpush3.msra.mxu1 %v1706_v11  ;;  %1251 = vmatprep.subr.mxu0 %v1649_v0  ;;  %p1629_p8 = por %p1628_p7, %p1627_p6 }
  0x1d   :  { %1224 = vmatprep.subr.mxu1 %v1649_v0  ;;  %1252 = vmatpush3.msra.mxu0 %v1686_v5 }
  0x1e   :  { %1225 = vmatpush3.msra.mxu1 %v1712_v12  ;;  %1253 = vmatprep.subr.mxu0 %v1649_v0  ;;  %p1630_p9 = pnand %p1629_p8, %p1623_p5 }
  0x1f   :  { %1226 = vmatprep.subr.mxu1 %v1649_v0  ;;  %1254 = vmatpush3.msra.mxu0 %v1693_v8 }
  0x20   :  { %1227 = vmatpush3.msra.mxu1 %v1718_v13  ;;  %1255 = vmatprep.subr.mxu0 %v1649_v0 }
  0x21   :  { %1228 = vmatprep.subr.mxu1 %v1649_v0  ;;  %1256 = vmatpush3.msra.mxu0 %v1700_v10 }
  0x22   :  { %1229 = vmatpush3.msra.mxu1 %v1724_v14  ;;  %1257 = vmatprep.subr.mxu0 %v1649_v0 }
  0x23   :  { %1230 = vmatprep.subr.mxu1 %v1649_v0  ;;  %1258 = vmatpush3.msra.mxu0 %v1706_v11 }
  0x24   :  { %1231 = vmatpush3.msra.mxu1 %v1730_v15  ;;  %1259 = vmatprep.subr.mxu0 %v1649_v0 }
  0x25   :  { %1232 = vmatprep.subr.mxu1 %v1649_v0  ;;  %1260 = vmatpush3.msra.mxu0 %v1712_v12 }
  0x26   :  { %1233 = vmatpush3.msra.mxu1 %v1736_v16  ;;  %1261 = vmatprep.subr.mxu0 %v1649_v0 }
  0x27   :  { %1234 = vmatprep.subr.mxu1 %v1649_v0  ;;  %1262 = vmatpush3.msra.mxu0 %v1718_v13 }
  0x28   :  { %1235 = vmatpush3.msra.mxu1 %v1742_v17  ;;  %1263 = vmatprep.subr.mxu0 %v1649_v0 }
  0x29   :  { %1236 = vmatprep.subr.mxu1 %v1649_v0  ;;  %1264 = vmatpush3.msra.mxu0 %v1724_v14 }
  0x2a   :  { %1237 = vmatpush3.msra.mxu1 %v1748_v18  ;;  %1265 = vmatprep.subr.mxu0 %v1649_v0 }
  0x2b   :  { %1238 = vmatprep.subr.mxu1 %v1649_v0  ;;  %1266 = vmatpush3.msra.mxu0 %v1730_v15 }
  0x2c   :  { %1239 = vmatpush3.msra.mxu1 %v1754_v19  ;;  %1267 = vmatprep.subr.mxu0 %v1649_v0 }
  0x2d   :  { %1240 = vmatprep.subr.mxu1 %v1649_v0  ;;  %1268 = vmatpush3.msra.mxu0 %v1736_v16 }
  0x2e   :  { %1241 = vmatpush3.msra.mxu1 %v1760_v20  ;;  %1269 = vmatprep.subr.mxu0 %v1649_v0 }
  0x2f   :  { %1243 = vmatmul.mubr.f32.vlgmr.msra.gmra.mxu1 %v1649_v0  ;;  %1280 = vmatprep.subr.mxu1 %v1649_v0 }
  0x30   :  { %1281 = vmatpush3.msra.mxu1 %v1676_v1  ;;  %1270 = vmatpush3.msra.mxu0 %v1742_v17 }
  0x31   :  { %1282 = vmatprep.subr.mxu1 %v1649_v0  ;;  %1271 = vmatprep.subr.mxu0 %v1649_v0 }
  0x32   :  { %1283 = vmatpush3.msra.mxu1 %v1678_v2  ;;  %1272 = vmatpush3.msra.mxu0 %v1748_v18 }
  0x33   :  { %1284 = vmatprep.subr.mxu1 %v1649_v0  ;;  %1273 = vmatprep.subr.mxu0 %v1649_v0 }
  0x34   :  { %1285 = vmatpush3.msra.mxu1 %v1682_v3  ;;  %1274 = vmatpush3.msra.mxu0 %v1754_v19 }
  0x35   :  { %1286 = vmatprep.subr.mxu1 %v1649_v0  ;;  %1275 = vmatprep.subr.mxu0 %v1649_v0 }
  0x36   :  { %1287 = vmatpush3.msra.mxu1 %v1686_v5  ;;  %1276 = vmatpush3.msra.mxu0 %v1760_v20 }
  0x37   :  { %1288 = vmatprep.subr.mxu1 %v1649_v0  ;;  %1312 = vmatprep.mubr.msk.f32.mxu1 %vm1650_vm0, %v1649_v0 }
  0x38   :  { %1289 = vmatpush3.msra.mxu1 %v1693_v8  ;;  %1315 = vmatprep.subr.mxu0 %v1649_v0 }
  0x39   :  { %1290 = vmatprep.subr.mxu1 %v1649_v0  ;;  %1201 = vmatprep.mubr.msk.f32.mxu0 %vm57_vm1, %v47_v31 }
  0x3a   :  { %1291 = vmatpush3.msra.mxu1 %v1700_v10  ;;  %1202 = vmatmul.mubr.msk.f32.gmra.mxu0 %vm57_vm1, %v48_v32 }
  0x3b   :  { %1292 = vmatprep.subr.mxu1 %v1649_v0  ;;  %1204 = vmatprep.mubr.msk.f32.mxu0 %vm57_vm1, %v49_v33 }
  0x3c   :  { %1293 = vmatpush3.msra.mxu1 %v1706_v11 }
  0x3d   :  { %1294 = vmatprep.subr.mxu1 %v1649_v0 }
  0x3e   :  { %1295 = vmatpush3.msra.mxu1 %v1712_v12  ;;  %1205 = vmatmul.mubr.msk.f32.gmra.mxu0 %vm57_vm1, %v50_v34 }
  0x3f   :  { %1296 = vmatprep.subr.mxu1 %v1649_v0  ;;  %1207 = vmatprep.mubr.msk.f32.mxu0 %vm57_vm1, %v51_v36 }
  0x40   :  { %1297 = vmatpush3.msra.mxu1 %v1718_v13 }
  0x41   :  { %1298 = vmatprep.subr.mxu1 %v1649_v0 }
  0x42   :  { %1299 = vmatpush3.msra.mxu1 %v1724_v14  ;;  %1208 = vmatmul.mubr.msk.f32.gmra.mxu0 %vm57_vm1, %v52_v37 }
  0x43   :  { %1300 = vmatprep.subr.mxu1 %v1649_v0  ;;  %1277 = vmatprep.mubr.msk.f32.mxu0 %vm1650_vm0, %v1649_v0 }
  0x44   :  { %1301 = vmatpush3.msra.mxu1 %v1730_v15 }
  0x45   :  { %1302 = vmatprep.subr.mxu1 %v1649_v0 }
  0x46   :  { %1303 = vmatpush3.msra.mxu1 %v1736_v16 }
  0x47   :  { %1304 = vmatprep.subr.mxu1 %v1649_v0 }
  0x48   :  { %1305 = vmatpush3.msra.mxu1 %v1742_v17 }
  0x49   :  { %1306 = vmatprep.subr.mxu1 %v1649_v0 }
  0x4a   :  { %1307 = vmatpush3.msra.mxu1 %v1748_v18 }
  0x4b   :  { %1308 = vmatprep.subr.mxu1 %v1649_v0 }
  0x4c   :  { %1309 = vmatpush3.msra.mxu1 %v1754_v19 }
  0x4d   :  { %1310 = vmatprep.subr.mxu1 %v1649_v0 }
  0x4e   :  { %1311 = vmatpush3.msra.mxu1 %v1760_v20 }
  0x4f   :  { %1350 = vmatprep.subr.mxu1 %v1649_v0 }
  0xd5   :  { %v1816_v21 = vpop.f32.mrf.mxu0 }
  0xd6   :  { %v154_v53 = vadd.f32 %v1816_v21, %v1818_v22 }
  0xd7   :  { %v148_v23 = vpop.f32.mrf.mxu0 }
  0xd8   :  { %v149_v24 = vadd.f32 %v1818_v22, %v148_v23 }
  0xef   :  { %v253_v25 = vpop.f32.mrf.mxu1 }
  0xf0   :  { %v257_v26 = vadd.f32 %v253_v25, %v149_v24 }
  0xf1   :  { %v1244_v27 = vpop.f32.mrf.mxu1 }
  0xf2   :  { %v1021_v28 = vmul.f32 -1.442695, %v257_v26 }
  0xf4   :  { %1534 = vpow2.f32 %v1021_v28 }
  0xfa   :  { %v1887_v47 = vpop.f32.mrf.mxu0 }
  0xfc   :  { %v1889_v48 = vpop.f32.mrf.mxu0 }
  0xfd   :  { %v159_v24 = vadd.f32 %v1818_v22, %v1889_v48 }
  0xfe   :  { %v1891_v49 = vpop.f32.mrf.mxu0 }
 0x100   :  { %v1893_v50 = vpop.f32.mrf.mxu0 }
 0x101   :  { %v1535_v29 = vpop.eup %1534 }
 0x102   :  { %v261_v30 = vadd.f32 1.0, %v1535_v29  ;;  %v1895_v51 = vpop.f32.mrf.mxu0 }
 0x104   :  { %1536 = vrcp.f32 %v261_v30  ;;  %v1897_v52 = vpop.f32.mrf.mxu0 }
 0x105   :  { %1538 = vtanh.f32 %v257_v26 }
 0x111   :  { %v1537_v35 = vpop.eup %1536 }
 0x112   :  { %269 = vrot.lane.b32.xlu1 %v1537_v35, %s1651_s29  ;;  %265 = vrot.lane.b32.xlu0 %v1537_v35, %s1652_s30  ;;  %v1539_v38 = vpop.eup %1538 }
 0x116   :  { %267 = vrot.lane.b32.xlu0 %v1539_v38, %s1653_s5 }
 0x184   :  { %v266_v39 = vpop.permute.xlu0 %265  ;;  %v270_v45 = vpop.permute.xlu1 %269 }
 0x185   :  { %v271_v41 = vmul.f32 0.0, %v266_v39 }
 0x188   :  { %v268_v40 = vpop.permute.xlu0 %267 }
 0x189   :  { %v272_v42 = vmul.f32 %v1537_v35, %v268_v40 }
 0x18b   :  { %v1850_v43 = vadd.f32 %v272_v42, %v271_v41  ;;  %v164_v41 = vadd.f32 %v1887_v47, %v1818_v22 }
 0x18d   :  { %1540 = vtanh.f32 %v1850_v43 }
 0x19a   :  { %v1541_v44 = vpop.eup %1540 }
 0x19b   :  { %v275_v46 = vmul.f32 %v1541_v44, %v270_v45 }
 0x19d   :  { %1278 = vmatmul.mubr.f32.vlgmr.msra.gmra.mxu0 %v275_v46 }
 0x19e   :  { %1316 = vmatpush3.msra.mxu0 %v1676_v1  ;;  %1347 = vmatprep.mubr.msk.f32.mxu0 %vm1650_vm0, %v1649_v0 }
 0x19f   :  { %1317 = vmatprep.subr.mxu0 %v1649_v0 }
 0x1a0   :  { %1318 = vmatpush3.msra.mxu0 %v1678_v2 }
 0x1a1   :  { %1319 = vmatprep.subr.mxu0 %v1649_v0 }
 0x1a2   :  { %1320 = vmatpush3.msra.mxu0 %v1682_v3 }
 0x1a3   :  { %1321 = vmatprep.subr.mxu0 %v1649_v0 }
 0x1a4   :  { %1322 = vmatpush3.msra.mxu0 %v1686_v5 }
 0x1a5   :  { %1323 = vmatprep.subr.mxu0 %v1649_v0 }
 0x1a6   :  { %1324 = vmatpush3.msra.mxu0 %v1693_v8 }
 0x1a7   :  { %1325 = vmatprep.subr.mxu0 %v1649_v0 }
 0x1a8   :  { %1326 = vmatpush3.msra.mxu0 %v1700_v10 }
 0x1a9   :  { %1327 = vmatprep.subr.mxu0 %v1649_v0 }
 0x1aa   :  { %1328 = vmatpush3.msra.mxu0 %v1706_v11 }
 0x1ab   :  { %1329 = vmatprep.subr.mxu0 %v1649_v0 }
 0x1ac   :  { %1330 = vmatpush3.msra.mxu0 %v1712_v12 }
 0x1ad   :  { %1331 = vmatprep.subr.mxu0 %v1649_v0 }
 0x1ae   :  { %1332 = vmatpush3.msra.mxu0 %v1718_v13 }
 0x1af   :  { %1333 = vmatprep.subr.mxu0 %v1649_v0 }
 0x1b0   :  { %1334 = vmatpush3.msra.mxu0 %v1724_v14 }
 0x1b1   :  { %1335 = vmatprep.subr.mxu0 %v1649_v0 }
 0x1b2   :  { %1336 = vmatpush3.msra.mxu0 %v1730_v15 }
 0x1b3   :  { %1337 = vmatprep.subr.mxu0 %v1649_v0 }
 0x1b4   :  { %1338 = vmatpush3.msra.mxu0 %v1736_v16 }
 0x1b5   :  { %1339 = vmatprep.subr.mxu0 %v1649_v0 }
 0x1b6   :  { %1340 = vmatpush3.msra.mxu0 %v1742_v17 }
 0x1b7   :  { %1341 = vmatprep.subr.mxu0 %v1649_v0 }
 0x1b8   :  { %1342 = vmatpush3.msra.mxu0 %v1748_v18 }
 0x1b9   :  { %1343 = vmatprep.subr.mxu0 %v1649_v0 }
 0x1ba   :  { %1344 = vmatpush3.msra.mxu0 %v1754_v19 }
 0x1bb   :  { %1345 = vmatprep.subr.mxu0 %v1649_v0 }
 0x1bc   :  { %1346 = vmatpush3.msra.mxu0 %v1760_v20 }
 0x1bd   :  { %1385 = vmatprep.subr.mxu0 %v1649_v0 }
 0x25d   :  { %v342_v54 = vpop.f32.mrf.mxu0 }
 0x25e   :  { %v346_v55 = vadd.f32 %v342_v54, %v154_v53 }
 0x25f   :  { %v1279_v56 = vpop.f32.mrf.mxu0 }
 0x260   :  { %v1022_v57 = vmul.f32 -1.442695, %v346_v55  ;;  %1542 = vtanh.f32 %v346_v55 }
 0x262   :  { %1544 = vpow2.f32 %v1022_v57 }
 0x26d   :  { %v1543_v58 = vpop.eup %1542 }
 0x26e   :  { %356 = vrot.lane.b32.xlu0 %v1543_v58, %s1653_s5 }
 0x26f   :  { %v1545_v59 = vpop.eup %1544 }
 0x270   :  { %v350_v60 = vadd.f32 1.0, %v1545_v59 }
 0x272   :  { %1546 = vrcp.f32 %v350_v60 }
 0x27f   :  { %v1547_v61 = vpop.eup %1546 }
 0x280   :  { %354 = vrot.lane.b32.xlu1 %v1547_v61, %s1652_s30 }
 0x284   :  { %358 = vrot.lane.b32.xlu1 %v1547_v61, %s1651_s29 }
 0x2e0   :  { %v357_v62 = vpop.permute.xlu0 %356 }
 0x2e1   :  { %v361_v4 = vmul.f32 %v1547_v61, %v357_v62  ;;  %v169_v62 = vadd.f32 %v1818_v22, %v1893_v50 }
 0x2f2   :  { %v355_v63 = vpop.permute.xlu1 %354 }
 0x2f3   :  { %v360_v6 = vmul.f32 %v355_v63, %v1850_v43 }
 0x2f5   :  { %v362_v7 = vadd.f32 %v361_v4, %v360_v6 }
 0x2f6   :  { %v359_v21 = vpop.permute.xlu1 %358 }
 0x2f7   :  { %1548 = vtanh.f32 %v362_v7 }
 0x304   :  { %v1549_v9 = vpop.eup %1548 }
 0x305   :  { %v364_v23 = vmul.f32 %v1549_v9, %v359_v21 }
 0x307   :  { %1313 = vmatmul.mubr.f32.vlgmr.msra.gmra.mxu1 %v364_v23 }
 0x308   :  { %1351 = vmatpush3.msra.mxu1 %v1676_v1  ;;  %1382 = vmatprep.mubr.msk.f32.mxu1 %vm1650_vm0, %v1649_v0 }
 0x309   :  { %1352 = vmatprep.subr.mxu1 %v1649_v0 }
 0x30a   :  { %1353 = vmatpush3.msra.mxu1 %v1678_v2 }
 0x30b   :  { %1354 = vmatprep.subr.mxu1 %v1649_v0 }
 0x30c   :  { %1355 = vmatpush3.msra.mxu1 %v1682_v3 }
 0x30d   :  { %1356 = vmatprep.subr.mxu1 %v1649_v0 }
 0x30e   :  { %1357 = vmatpush3.msra.mxu1 %v1686_v5 }
 0x30f   :  { %1358 = vmatprep.subr.mxu1 %v1649_v0 }
 0x310   :  { %1359 = vmatpush3.msra.mxu1 %v1693_v8 }
 0x311   :  { %1360 = vmatprep.subr.mxu1 %v1649_v0 }
 0x312   :  { %1361 = vmatpush3.msra.mxu1 %v1700_v10 }
 0x313   :  { %1362 = vmatprep.subr.mxu1 %v1649_v0 }
 0x314   :  { %1363 = vmatpush3.msra.mxu1 %v1706_v11 }
 0x315   :  { %1364 = vmatprep.subr.mxu1 %v1649_v0 }
 0x316   :  { %1365 = vmatpush3.msra.mxu1 %v1712_v12 }
 0x317   :  { %1366 = vmatprep.subr.mxu1 %v1649_v0 }
 0x318   :  { %1367 = vmatpush3.msra.mxu1 %v1718_v13 }
 0x319   :  { %1368 = vmatprep.subr.mxu1 %v1649_v0 }
 0x31a   :  { %1369 = vmatpush3.msra.mxu1 %v1724_v14 }
 0x31b   :  { %1370 = vmatprep.subr.mxu1 %v1649_v0 }
 0x31c   :  { %1371 = vmatpush3.msra.mxu1 %v1730_v15 }
 0x31d   :  { %1372 = vmatprep.subr.mxu1 %v1649_v0 }
 0x31e   :  { %1373 = vmatpush3.msra.mxu1 %v1736_v16 }
 0x31f   :  { %1374 = vmatprep.subr.mxu1 %v1649_v0 }
 0x320   :  { %1375 = vmatpush3.msra.mxu1 %v1742_v17 }
 0x321   :  { %1376 = vmatprep.subr.mxu1 %v1649_v0 }
 0x322   :  { %1377 = vmatpush3.msra.mxu1 %v1748_v18 }
 0x323   :  { %1378 = vmatprep.subr.mxu1 %v1649_v0 }
 0x324   :  { %1379 = vmatpush3.msra.mxu1 %v1754_v19 }
 0x325   :  { %1380 = vmatprep.subr.mxu1 %v1649_v0 }
 0x326   :  { %1381 = vmatpush3.msra.mxu1 %v1760_v20 }
 0x327   :  { %1420 = vmatprep.subr.mxu1 %v1649_v0 }
 0x3c7   :  { %v431_v25 = vpop.f32.mrf.mxu1 }
 0x3c8   :  { %v435_v26 = vadd.f32 %v431_v25, %v159_v24 }
 0x3c9   :  { %v1314_v27 = vpop.f32.mrf.mxu1 }
 0x3ca   :  { %v1023_v28 = vmul.f32 -1.442695, %v435_v26  ;;  %1550 = vtanh.f32 %v435_v26 }
 0x3cc   :  { %1552 = vpow2.f32 %v1023_v28 }
 0x3d7   :  { %v1551_v29 = vpop.eup %1550 }
 0x3d8   :  { %445 = vrot.lane.b32.xlu1 %v1551_v29, %s1653_s5 }
 0x3d9   :  { %v1553_v30 = vpop.eup %1552 }
 0x3da   :  { %v439_v31 = vadd.f32 1.0, %v1553_v30 }
 0x3dc   :  { %1554 = vrcp.f32 %v439_v31 }
 0x3e9   :  { %v1555_v32 = vpop.eup %1554 }
 0x3ea   :  { %443 = vrot.lane.b32.xlu0 %v1555_v32, %s1652_s30 }
 0x3ee   :  { %447 = vrot.lane.b32.xlu0 %v1555_v32, %s1651_s29 }
 0x44a   :  { %v446_v33 = vpop.permute.xlu1 %445 }
 0x44b   :  { %v450_v35 = vmul.f32 %v1555_v32, %v446_v33  ;;  %v179_v32 = vadd.f32 %v1818_v22, %v1897_v52 }
 0x45c   :  { %v444_v34 = vpop.permute.xlu0 %443 }
 0x45d   :  { %v449_v36 = vmul.f32 %v444_v34, %v362_v7 }
 0x45f   :  { %v451_v37 = vadd.f32 %v450_v35, %v449_v36 }
 0x460   :  { %v448_v39 = vpop.permute.xlu0 %447 }
 0x461   :  { %1556 = vtanh.f32 %v451_v37 }
 0x46e   :  { %v1557_v38 = vpop.eup %1556 }
 0x46f   :  { %v453_v40 = vmul.f32 %v1557_v38, %v448_v39 }
 0x471   :  { %1348 = vmatmul.mubr.f32.vlgmr.msra.gmra.mxu0 %v453_v40 }
 0x472   :  { %1386 = vmatpush3.msra.mxu0 %v1676_v1  ;;  %1417 = vmatprep.mubr.msk.f32.mxu0 %vm1650_vm0, %v1649_v0 }
 0x473   :  { %1387 = vmatprep.subr.mxu0 %v1649_v0 }
 0x474   :  { %1388 = vmatpush3.msra.mxu0 %v1678_v2 }
 0x475   :  { %1389 = vmatprep.subr.mxu0 %v1649_v0 }
 0x476   :  { %1390 = vmatpush3.msra.mxu0 %v1682_v3 }
 0x477   :  { %1391 = vmatprep.subr.mxu0 %v1649_v0 }
 0x478   :  { %1392 = vmatpush3.msra.mxu0 %v1686_v5 }
 0x479   :  { %1393 = vmatprep.subr.mxu0 %v1649_v0 }
 0x47a   :  { %1394 = vmatpush3.msra.mxu0 %v1693_v8 }
 0x47b   :  { %1395 = vmatprep.subr.mxu0 %v1649_v0 }
 0x47c   :  { %1396 = vmatpush3.msra.mxu0 %v1700_v10 }
 0x47d   :  { %1397 = vmatprep.subr.mxu0 %v1649_v0 }
 0x47e   :  { %1398 = vmatpush3.msra.mxu0 %v1706_v11 }
 0x47f   :  { %1399 = vmatprep.subr.mxu0 %v1649_v0 }
 0x480   :  { %1400 = vmatpush3.msra.mxu0 %v1712_v12 }
 0x481   :  { %1401 = vmatprep.subr.mxu0 %v1649_v0 }
 0x482   :  { %1402 = vmatpush3.msra.mxu0 %v1718_v13 }
 0x483   :  { %1403 = vmatprep.subr.mxu0 %v1649_v0 }
 0x484   :  { %1404 = vmatpush3.msra.mxu0 %v1724_v14 }
 0x485   :  { %1405 = vmatprep.subr.mxu0 %v1649_v0 }
 0x486   :  { %1406 = vmatpush3.msra.mxu0 %v1730_v15 }
 0x487   :  { %1407 = vmatprep.subr.mxu0 %v1649_v0 }
 0x488   :  { %1408 = vmatpush3.msra.mxu0 %v1736_v16 }
 0x489   :  { %1409 = vmatprep.subr.mxu0 %v1649_v0 }
 0x48a   :  { %1410 = vmatpush3.msra.mxu0 %v1742_v17 }
 0x48b   :  { %1411 = vmatprep.subr.mxu0 %v1649_v0 }
 0x48c   :  { %1412 = vmatpush3.msra.mxu0 %v1748_v18 }
 0x48d   :  { %1413 = vmatprep.subr.mxu0 %v1649_v0 }
 0x48e   :  { %1414 = vmatpush3.msra.mxu0 %v1754_v19 }
 0x48f   :  { %1415 = vmatprep.subr.mxu0 %v1649_v0 }
 0x490   :  { %1416 = vmatpush3.msra.mxu0 %v1760_v20 }
 0x491   :  { %1455 = vmatprep.subr.mxu0 %v1649_v0 }
 0x531   :  { %v520_v42 = vpop.f32.mrf.mxu0 }
 0x532   :  { %v524_v43 = vadd.f32 %v520_v42, %v164_v41 }
 0x533   :  { %v1349_v44 = vpop.f32.mrf.mxu0 }
 0x534   :  { %v1024_v45 = vmul.f32 -1.442695, %v524_v43  ;;  %1558 = vtanh.f32 %v524_v43 }
 0x536   :  { %1560 = vpow2.f32 %v1024_v45 }
 0x541   :  { %v1559_v46 = vpop.eup %1558 }
 0x542   :  { %534 = vrot.lane.b32.xlu0 %v1559_v46, %s1653_s5 }
 0x543   :  { %v1561_v48 = vpop.eup %1560 }
 0x544   :  { %v528_v53 = vadd.f32 1.0, %v1561_v48 }
 0x546   :  { %1562 = vrcp.f32 %v528_v53  ;;  %v184_v53 = vadd.f32 %v1895_v51, %v1818_v22  ;;  %v909_v51 = vld [vmem:[#allocation2 + $0xe0] sm:$0xff] }
 0x553   :  { %v1563_v54 = vpop.eup %1562 }
 0x554   :  { %532 = vrot.lane.b32.xlu1 %v1563_v54, %s1652_s30 }
 0x558   :  { %536 = vrot.lane.b32.xlu1 %v1563_v54, %s1651_s29 }
 0x5b4   :  { %v535_v55 = vpop.permute.xlu0 %534 }
 0x5b5   :  { %v539_v47 = vmul.f32 %v1563_v54, %v535_v55 }
 0x5c6   :  { %v533_v56 = vpop.permute.xlu1 %532 }
 0x5c7   :  { %v538_v57 = vmul.f32 %v533_v56, %v451_v37 }
 0x5c9   :  { %v540_v58 = vadd.f32 %v539_v47, %v538_v57  ;;  %v914_v57 = vld [vmem:[#allocation2 + $0x108] sm:$0xff] }
 0x5ca   :  { %v537_v60 = vpop.permute.xlu1 %536 }
 0x5cb   :  { %1564 = vtanh.f32 %v540_v58 }
 0x5d8   :  { %v1565_v59 = vpop.eup %1564 }
 0x5d9   :  { %v542_v61 = vmul.f32 %v1565_v59, %v537_v60  ;;  %v912_v59 = vld [vmem:[#allocation2 + $0xf8] sm:$0xff]  ;;  %v911_v60 = vld [vmem:[#allocation2 + $0xf0] sm:$0xff] }
 0x5db   :  { %1383 = vmatmul.mubr.f32.vlgmr.msra.gmra.mxu1 %v542_v61 }
 0x5dc   :  { %1421 = vmatpush3.msra.mxu1 %v1676_v1  ;;  %1452 = vmatprep.mubr.msk.f32.mxu1 %vm1650_vm0, %v1649_v0 }
 0x5dd   :  { %1422 = vmatprep.subr.mxu1 %v1649_v0 }
 0x5de   :  { %1423 = vmatpush3.msra.mxu1 %v1678_v2 }
 0x5df   :  { %1424 = vmatprep.subr.mxu1 %v1649_v0 }
 0x5e0   :  { %1425 = vmatpush3.msra.mxu1 %v1682_v3 }
 0x5e1   :  { %1426 = vmatprep.subr.mxu1 %v1649_v0 }
 0x5e2   :  { %1427 = vmatpush3.msra.mxu1 %v1686_v5 }
 0x5e3   :  { %1428 = vmatprep.subr.mxu1 %v1649_v0 }
 0x5e4   :  { %1429 = vmatpush3.msra.mxu1 %v1693_v8 }
 0x5e5   :  { %1430 = vmatprep.subr.mxu1 %v1649_v0 }
 0x5e6   :  { %1431 = vmatpush3.msra.mxu1 %v1700_v10 }
 0x5e7   :  { %1432 = vmatprep.subr.mxu1 %v1649_v0 }
 0x5e8   :  { %1433 = vmatpush3.msra.mxu1 %v1706_v11 }
 0x5e9   :  { %1434 = vmatprep.subr.mxu1 %v1649_v0 }
 0x5ea   :  { %1435 = vmatpush3.msra.mxu1 %v1712_v12 }
 0x5eb   :  { %1436 = vmatprep.subr.mxu1 %v1649_v0 }
 0x5ec   :  { %1437 = vmatpush3.msra.mxu1 %v1718_v13 }
 0x5ed   :  { %1438 = vmatprep.subr.mxu1 %v1649_v0 }
 0x5ee   :  { %1439 = vmatpush3.msra.mxu1 %v1724_v14 }
 0x5ef   :  { %1440 = vmatprep.subr.mxu1 %v1649_v0 }
 0x5f0   :  { %1441 = vmatpush3.msra.mxu1 %v1730_v15 }
 0x5f1   :  { %1442 = vmatprep.subr.mxu1 %v1649_v0 }
 0x5f2   :  { %1443 = vmatpush3.msra.mxu1 %v1736_v16 }
 0x5f3   :  { %1444 = vmatprep.subr.mxu1 %v1649_v0 }
 0x5f4   :  { %1445 = vmatpush3.msra.mxu1 %v1742_v17 }
 0x5f5   :  { %1446 = vmatprep.subr.mxu1 %v1649_v0 }
 0x5f6   :  { %1447 = vmatpush3.msra.mxu1 %v1748_v18 }
 0x5f7   :  { %1448 = vmatprep.subr.mxu1 %v1649_v0 }
 0x5f8   :  { %1449 = vmatpush3.msra.mxu1 %v1754_v19 }
 0x5f9   :  { %1450 = vmatprep.subr.mxu1 %v1649_v0 }
 0x5fa   :  { %1451 = vmatpush3.msra.mxu1 %v1760_v20 }
 0x5fb   :  { %1490 = vmatprep.subr.mxu1 %v1649_v0 }
 0x69b   :  { %v609_v63 = vpop.f32.mrf.mxu1 }
 0x69c   :  { %v613_v4 = vadd.f32 %v609_v63, %v169_v62 }
 0x69d   :  { %v1384_v6 = vpop.f32.mrf.mxu1 }
 0x69e   :  { %v1025_v7 = vmul.f32 -1.442695, %v613_v4  ;;  %1566 = vtanh.f32 %v613_v4  ;;  %v908_v4 = vld [vmem:[#allocation2 + $0xd8] sm:$0xff]  ;;  %v907_v6 = vld [vmem:[#allocation2 + $0xd0] sm:$0xff] }
 0x6a0   :  { %1568 = vpow2.f32 %v1025_v7  ;;  %v906_v7 = vld [vmem:[#allocation2 + $0xc8] sm:$0xff] }
 0x6ab   :  { %v1567_v9 = vpop.eup %1566 }
 0x6ac   :  { %623 = vrot.lane.b32.xlu1 %v1567_v9, %s1653_s5  ;;  %v905_v9 = vld [vmem:[#allocation2 + $0xc0] sm:$0xff] }
 0x6ad   :  { %v1569_v21 = vpop.eup %1568 }
 0x6ae   :  { %v617_v23 = vadd.f32 1.0, %v1569_v21  ;;  %v904_v21 = vld [vmem:[#allocation2 + $0xb8] sm:$0xff] }
 0x6b0   :  { %1570 = vrcp.f32 %v617_v23  ;;  %v903_v23 = vld [vmem:[#allocation2 + $0xb0] sm:$0xff] }
 0x6bd   :  { %v1571_v24 = vpop.eup %1570 }
 0x6be   :  { %621 = vrot.lane.b32.xlu0 %v1571_v24, %s1652_s30 }
 0x6c2   :  { %625 = vrot.lane.b32.xlu0 %v1571_v24, %s1651_s29 }
 0x71e   :  { %v624_v25 = vpop.permute.xlu1 %623 }
 0x71f   :  { %v628_v50 = vmul.f32 %v1571_v24, %v624_v25  ;;  %v902_v25 = vld [vmem:[#allocation2 + $0xa8] sm:$0xff] }
 0x730   :  { %v622_v26 = vpop.permute.xlu0 %621 }
 0x731   :  { %v627_v27 = vmul.f32 %v622_v26, %v540_v58  ;;  %v913_v58 = vld [vmem:[#allocation2 + $0x100] sm:$0xff] }
 0x732   :  { %v901_v26 = vld [vmem:[#allocation2 + $0xa0] sm:$0xff] }
 0x733   :  { %v629_v28 = vadd.f32 %v628_v50, %v627_v27  ;;  %v900_v50 = vld [vmem:[#allocation2 + $0x98] sm:$0xff]  ;;  %v899_v27 = vld [vmem:[#allocation2 + $0x90] sm:$0xff] }
 0x734   :  { %v626_v30 = vpop.permute.xlu0 %625 }
 0x735   :  { %1572 = vtanh.f32 %v629_v28 }
 0x742   :  { %v1573_v29 = vpop.eup %1572 }
 0x743   :  { %v631_v31 = vmul.f32 %v1573_v29, %v626_v30 }
 0x745   :  { %1418 = vmatmul.mubr.f32.vlgmr.msra.gmra.mxu0 %v631_v31 }
 0x746   :  { %1456 = vmatpush3.msra.mxu0 %v1676_v1  ;;  %1487 = vmatprep.mubr.msk.f32.mxu0 %vm1650_vm0, %v1649_v0  ;;  %v174_v1 = vadd.f32 %v1891_v49, %v1818_v22  ;;  %v910_v22 = vld [vmem:[#allocation2 + $0xe8] sm:$0xff] }
 0x747   :  { %1457 = vmatprep.subr.mxu0 %v1649_v0 }
 0x748   :  { %1458 = vmatpush3.msra.mxu0 %v1678_v2 }
 0x749   :  { %1459 = vmatprep.subr.mxu0 %v1649_v0 }
 0x74a   :  { %1460 = vmatpush3.msra.mxu0 %v1682_v3 }
 0x74b   :  { %1461 = vmatprep.subr.mxu0 %v1649_v0 }
 0x74c   :  { %1462 = vmatpush3.msra.mxu0 %v1686_v5 }
 0x74d   :  { %1463 = vmatprep.subr.mxu0 %v1649_v0 }
 0x74e   :  { %1464 = vmatpush3.msra.mxu0 %v1693_v8 }
 0x74f   :  { %1465 = vmatprep.subr.mxu0 %v1649_v0 }
 0x750   :  { %1466 = vmatpush3.msra.mxu0 %v1700_v10 }
 0x751   :  { %1467 = vmatprep.subr.mxu0 %v1649_v0 }
 0x752   :  { %1468 = vmatpush3.msra.mxu0 %v1706_v11 }
 0x753   :  { %1469 = vmatprep.subr.mxu0 %v1649_v0 }
 0x754   :  { %1470 = vmatpush3.msra.mxu0 %v1712_v12 }
 0x755   :  { %1471 = vmatprep.subr.mxu0 %v1649_v0 }
 0x756   :  { %1472 = vmatpush3.msra.mxu0 %v1718_v13 }
 0x757   :  { %1473 = vmatprep.subr.mxu0 %v1649_v0 }
 0x758   :  { %1474 = vmatpush3.msra.mxu0 %v1724_v14 }
 0x759   :  { %1475 = vmatprep.subr.mxu0 %v1649_v0 }
 0x75a   :  { %1476 = vmatpush3.msra.mxu0 %v1730_v15 }
 0x75b   :  { %1477 = vmatprep.subr.mxu0 %v1649_v0 }
 0x75c   :  { %1478 = vmatpush3.msra.mxu0 %v1736_v16 }
 0x75d   :  { %1479 = vmatprep.subr.mxu0 %v1649_v0 }
 0x75e   :  { %1480 = vmatpush3.msra.mxu0 %v1742_v17 }
 0x75f   :  { %1481 = vmatprep.subr.mxu0 %v1649_v0 }
 0x760   :  { %1482 = vmatpush3.msra.mxu0 %v1748_v18 }
 0x761   :  { %1483 = vmatprep.subr.mxu0 %v1649_v0 }
 0x762   :  { %1484 = vmatpush3.msra.mxu0 %v1754_v19 }
 0x763   :  { %1485 = vmatprep.subr.mxu0 %v1649_v0 }
 0x764   :  { %1486 = vmatpush3.msra.mxu0 %v1760_v20 }
 0x805   :  { %v698_v2 = vpop.f32.mrf.mxu0 }
 0x806   :  { %v702_v3 = vadd.f32 %v698_v2, %v174_v1 }
 0x807   :  { %v1419_v5 = vpop.f32.mrf.mxu0 }
 0x808   :  { %v1026_v8 = vmul.f32 -1.442695, %v702_v3  ;;  %1574 = vtanh.f32 %v702_v3 }
 0x80a   :  { %1576 = vpow2.f32 %v1026_v8  ;;  %v1029_v8 = vld [vmem:[#allocation2 + $0x118] ss:$0 sm:$0xff] }
 0x815   :  { %v1575_v10 = vpop.eup %1574 }
 0x816   :  { %712 = vrot.lane.b32.xlu0 %v1575_v10, %s1653_s5 }
 0x817   :  { %v1577_v11 = vpop.eup %1576 }
 0x818   :  { %v706_v12 = vadd.f32 1.0, %v1577_v11 }
 0x81a   :  { %1578 = vrcp.f32 %v706_v12 }
 0x827   :  { %v1579_v13 = vpop.eup %1578 }
 0x828   :  { %710 = vrot.lane.b32.xlu1 %v1579_v13, %s1652_s30 }
 0x82c   :  { %714 = vrot.lane.b32.xlu1 %v1579_v13, %s1651_s29 }
 0x888   :  { %v713_v14 = vpop.permute.xlu0 %712 }
 0x889   :  { %v717_v16 = vmul.f32 %v1579_v13, %v713_v14 }
 0x89a   :  { %v711_v15 = vpop.permute.xlu1 %710 }
 0x89b   :  { %v716_v17 = vmul.f32 %v711_v15, %v629_v28 }
 0x89d   :  { %v718_v18 = vadd.f32 %v717_v16, %v716_v17 }
 0x89e   :  { %v715_v20 = vpop.permute.xlu1 %714 }
 0x89f   :  { %1580 = vtanh.f32 %v718_v18 }
 0x8ac   :  { %v1581_v19 = vpop.eup %1580 }
 0x8ad   :  { %v720_v49 = vmul.f32 %v1581_v19, %v715_v20 }
 0x8af   :  { %1453 = vmatmul.mubr.f32.vlgmr.msra.gmra.mxu1 %v720_v49 }
 0x8b0   :  { %1522 = vmatprep.mubr.msk.f32.mxu1 %vm1650_vm0, %v1649_v0  ;;  %1491 = vmatpush3.msra.mxu1 %v914_v57 }
 0x8b1   :  { %1492 = vmatprep.subr.mxu1 %v1649_v0 }
 0x8b2   :  { %1493 = vmatpush3.msra.mxu1 %v913_v58 }
 0x8b3   :  { %1494 = vmatprep.subr.mxu1 %v1649_v0 }
 0x8b4   :  { %1495 = vmatpush3.msra.mxu1 %v912_v59 }
 0x8b5   :  { %1496 = vmatprep.subr.mxu1 %v1649_v0 }
 0x8b6   :  { %1497 = vmatpush3.msra.mxu1 %v911_v60 }
 0x8b7   :  { %1498 = vmatprep.subr.mxu1 %v1649_v0 }
 0x8b8   :  { %1499 = vmatpush3.msra.mxu1 %v910_v22 }
 0x8b9   :  { %1500 = vmatprep.subr.mxu1 %v1649_v0 }
 0x8ba   :  { %1501 = vmatpush3.msra.mxu1 %v909_v51 }
 0x8bb   :  { %1502 = vmatprep.subr.mxu1 %v1649_v0 }
 0x8bc   :  { %1503 = vmatpush3.msra.mxu1 %v908_v4 }
 0x8bd   :  { %1504 = vmatprep.subr.mxu1 %v1649_v0 }
 0x8be   :  { %1505 = vmatpush3.msra.mxu1 %v907_v6 }
 0x8bf   :  { %1506 = vmatprep.subr.mxu1 %v1649_v0 }
 0x8c0   :  { %1507 = vmatpush3.msra.mxu1 %v906_v7 }
 0x8c1   :  { %1508 = vmatprep.subr.mxu1 %v1649_v0 }
 0x8c2   :  { %1509 = vmatpush3.msra.mxu1 %v905_v9 }
 0x8c3   :  { %1510 = vmatprep.subr.mxu1 %v1649_v0 }
 0x8c4   :  { %1511 = vmatpush3.msra.mxu1 %v904_v21 }
 0x8c5   :  { %1512 = vmatprep.subr.mxu1 %v1649_v0 }
 0x8c6   :  { %1513 = vmatpush3.msra.mxu1 %v903_v23 }
 0x8c7   :  { %1514 = vmatprep.subr.mxu1 %v1649_v0 }
 0x8c8   :  { %1515 = vmatpush3.msra.mxu1 %v902_v25 }
 0x8c9   :  { %1516 = vmatprep.subr.mxu1 %v1649_v0 }
 0x8ca   :  { %1517 = vmatpush3.msra.mxu1 %v901_v26 }
 0x8cb   :  { %1518 = vmatprep.subr.mxu1 %v1649_v0 }
 0x8cc   :  { %1519 = vmatpush3.msra.mxu1 %v900_v50 }
 0x8cd   :  { %1520 = vmatprep.subr.mxu1 %v1649_v0 }
 0x8ce   :  { %1521 = vmatpush3.msra.mxu1 %v899_v27 }
 0x96f   :  { %v787_v33 = vpop.f32.mrf.mxu1 }
 0x970   :  { %v791_v34 = vadd.f32 %v787_v33, %v179_v32 }
 0x971   :  { %v1454_v35 = vpop.f32.mrf.mxu1 }
 0x972   :  { %v1027_v36 = vmul.f32 -1.442695, %v791_v34  ;;  %1582 = vtanh.f32 %v791_v34 }
 0x974   :  { %1584 = vpow2.f32 %v1027_v36 }
 0x97f   :  { %v1583_v37 = vpop.eup %1582 }
 0x980   :  { %801 = vrot.lane.b32.xlu1 %v1583_v37, %s1653_s5 }
 0x981   :  { %v1585_v38 = vpop.eup %1584 }
 0x982   :  { %v795_v39 = vadd.f32 1.0, %v1585_v38 }
 0x984   :  { %1586 = vrcp.f32 %v795_v39 }
 0x991   :  { %v1587_v40 = vpop.eup %1586 }
 0x992   :  { %799 = vrot.lane.b32.xlu0 %v1587_v40, %s1652_s30 }
 0x996   :  { %803 = vrot.lane.b32.xlu0 %v1587_v40, %s1651_s29 }
 0x9f2   :  { %v802_v41 = vpop.permute.xlu1 %801 }
 0x9f3   :  { %v806_v52 = vmul.f32 %v1587_v40, %v802_v41 }
 0xa04   :  { %v800_v42 = vpop.permute.xlu0 %799 }
 0xa05   :  { %v805_v43 = vmul.f32 %v800_v42, %v718_v18 }
 0xa07   :  { %v2067_v44 = vadd.f32 %v806_v52, %v805_v43 }
 0xa08   :  { %v804_v46 = vpop.permute.xlu0 %803 }
 0xa09   :  { %1588 = vtanh.f32 %v2067_v44 }
 0xa16   :  { %v1589_v45 = vpop.eup %1588 }
 0xa17   :  { %v809_v48 = vmul.f32 %v1589_v45, %v804_v46 }
 0xa19   :  { %1488 = vmatmul.mubr.f32.vlgmr.msra.gmra.mxu0 %v809_v48 }
 0xad9   :  { %v876_v54 = vpop.f32.mrf.mxu0 }
 0xada   :  { %v880_v55 = vadd.f32 %v876_v54, %v184_v53 }
 0xadb   :  { %v1489_v56 = vpop.f32.mrf.mxu0 }
 0xadc   :  { %v1028_v47 = vmul.f32 -1.442695, %v880_v55  ;;  %1590 = vtanh.f32 %v880_v55 }
 0xade   :  { %1592 = vpow2.f32 %v1028_v47 }
 0xae9   :  { %v1591_v61 = vpop.eup %1590 }
 0xaea   :  { %890 = vrot.lane.b32.xlu0 %v1591_v61, %s1653_s5 }
 0xaeb   :  { %v1593_v62 = vpop.eup %1592 }
 0xaec   :  { %v884_v63 = vadd.f32 1.0, %v1593_v62 }
 0xaee   :  { %1594 = vrcp.f32 %v884_v63 }
 0xafb   :  { %v1595_v24 = vpop.eup %1594 }
 0xafc   :  { %888 = vrot.lane.b32.xlu1 %v1595_v24, %s1652_s30 }
 0xb00   :  { %892 = vrot.lane.b32.xlu1 %v1595_v24, %s1651_s29 }
 0xb5c   :  { %v891_v28 = vpop.permute.xlu0 %890 }
 0xb5d   :  { %v895_v30 = vmul.f32 %v1595_v24, %v891_v28 }
 0xb6e   :  { %v889_v29 = vpop.permute.xlu1 %888 }
 0xb6f   :  { %v894_v31 = vmul.f32 %v889_v29, %v2067_v44 }
 0xb71   :  { %v896_v1 = vadd.f32 %v895_v30, %v894_v31 }
 0xb72   :  { %v893_v3 = vpop.permute.xlu1 %892 }
 0xb73   :  { %1596 = vtanh.f32 %v896_v1 }
 0xb80   :  { %v1597_v2 = vpop.eup %1596 }
 0xb81   :  { %v898_v5 = vmul.f32 %v1597_v2, %v893_v3 }
 0xb83   :  { %1523 = vmatmul.mubr.f32.vlgmr.msra.gmra.mxu1 %v898_v5 }
 0xc43   :  { %v986_v10 = vpop.f32.mrf.mxu1 }
 0xc44   :  { %v987_v11 = vadd.f32 %v1029_v8, %v986_v10 }
 0xc45   :  { %v1524_v12 = vpop.f32.mrf.mxu1 }
 0xc46   :  { %v1030_v13 = vmul.f32 -1.442695, %v987_v11 }
 0xc48   :  { %1598 = vpow2.f32 %v1030_v13 }
 0xc55   :  { %v1599_v0 = vpop.eup %1598 }
 0xc56   :  { %v993_v14 = vadd.f32 1.0, %v1599_v0 }
 0xc58   :  { %1600 = vrcp.f32 %v993_v14 }
 0xc65   :  { %v1601_v15 = vpop.eup %1600 }
 0xc66   :  { %996 = vst [vmem:[#allocation5] sm:$0xff] %v1601_v15 }
 0xc67   :  { %1633 = shalt.err (!%p1630_p9)
}
 0xc68   :  { %1006 = dma.vmem_to_hbm [thread:$0]  %s1004_s6, 128, %s2096_s2, [#allocation4]  }
 0xc69   :  { %1644 = dma.done.wait [#allocation4], 128  }
 0xc6a   :  { %1645 = vsyncadd [#allocation4], 4294967168 }
 0xc6b   :  { %1010 = vsyncpa [#allocation3], 1 }
 0xc6c   :  { %1011 = vsyncpa [#allocation4], 1 }

</bundles_post_ra>
